<compile_context>
chip_gen: v5e
topology: v5e:2x2
jax: 0.10.0
libtpu: 0.0.40
codegen_flags: <defaults>
</compile_context>

<pallas_src>
import functools

import jax
import jax.numpy as jnp
from jax.experimental import pallas as pl
from jax.experimental.pallas import tpu as pltpu


def _cdiv(a, b):
    return -(-a // b)


def _round_up(x, m):
    return ((x + m - 1) // m) * m


def _choose_tile_n(n_rows, vocab, itemsize):
    """Largest multiple-of-8 row tile whose double-buffered input fits ~32 MiB."""
    budget = 32 * 1024 * 1024
    rows = budget // (2 * vocab * itemsize)
    rows = max(8, min(int(rows), 2048))
    rows = (rows // 8) * 8
    if rows >= 128:                      # prefer multiples of 128 rows
        rows = (rows // 128) * 128
    rows = min(rows, _round_up(n_rows, 8))
    return max(8, rows)


def _lm_crit_kernel(inp_ref, tgt_ref, msk_ref, num_ref, den_ref, *,
                    tile_n, n_rows, tiles_per_core):
    c = pl.program_id(0)    # megacore split axis ("parallel")
    j = pl.program_id(1)    # row-tile reduction axis ("arbitrary")

    # Output blocks are resident across j (same block index): init at j == 0.
    @pl.when(j == 0)
    def _init():
        num_ref[...] = jnp.zeros_like(num_ref)
        den_ref[...] = jnp.zeros_like(den_ref)

    # Linear row-tile index (may point past the last real tile for "phantom"
    # iterations on the second core; those rows are masked out below).
    t = c * tiles_per_core + j
    row0 = t * tile_n

    logp = inp_ref[...].astype(jnp.float32)            # (tile_n, V)
    tgt = tgt_ref[...]                                  # (tile_n, 1) int32

    # Row-validity mask: kills the ragged tail of the last tile and phantom
    # tiles (their buffer contents are undefined / possibly NaN).
    local = jax.lax.broadcasted_iota(jnp.int32, (tile_n, 1), 0)
    valid = (row0 + local) < n_rows                     # (tile_n, 1) bool
    msk = jnp.where(valid, msk_ref[...], 0.0)           # (tile_n, 1) f32, NaN-safe

    # Gather input[row, target[row]] via one-hot select + row reduction (VPU/XLU).
    col = jax.lax.broadcasted_iota(jnp.int32, logp.shape, 1)
    sel = jnp.where((col == tgt) & valid, logp, 0.0)    # (tile_n, V), NaN-safe
    gathered = jnp.sum(sel, axis=1, keepdims=True)      # (tile_n, 1)

    # Per-row partial sums accumulated straight into the resident output blocks.
    num_ref[...] += gathered * msk
    den_ref[...] += msk


def language_model_criterion(inp, target, mask, *, tile_n=None):
    """inp: (B, T, V) log-probs (f32 or bf16); target: (B, >=T) int; mask: (B, >=T)."""
    B, T, V = inp.shape
    target = target[:, :T].astype(jnp.int32)
    mask = mask[:, :T].astype(jnp.float32)

    # Stream the big tensor in its native dtype (bf16 halves HBM read traffic);
    # only exotic dtypes get a wrapper-side cast.
    if inp.dtype not in (jnp.float32, jnp.bfloat16):
        inp = inp.astype(jnp.float32)
    itemsize = jnp.dtype(inp.dtype).itemsize

    N = B * T
    inp2 = inp.reshape(N, V)        # free reshape; no pad, no cast of the big tensor
    tgt2 = target.reshape(N, 1)
    msk2 = mask.reshape(N, 1)

    if tile_n is None:
        tile_n = _choose_tile_n(N, V, itemsize)
    assert tile_n % 8 == 0, "row tile must be sublane-aligned"

    n_tiles = _cdiv(N, tile_n)
    num_cores = 2 if n_tiles >= 2 else 1      # split row tiles across v7x's 2 TCs
    tiles_per_core = _cdiv(n_tiles, num_cores)

    def row_block(c, j):
        # Clamp phantom tiles to the last real tile; their rows are masked out
        # inside the kernel via the row-validity check.
        return (jnp.minimum(c * tiles_per_core + j, n_tiles - 1), 0)

    kernel = functools.partial(_lm_crit_kernel, tile_n=tile_n, n_rows=N,
                               tiles_per_core=tiles_per_core)

    # Raise the scoped-VMEM limit only when the tile actually needs it
    # (double-buffered input tile + lane-padded side/output buffers).
    est_vmem = 2 * tile_n * V * itemsize + 8 * tile_n * 128 * 4
    cp = dict(dimension_semantics=("parallel", "arbitrary"))
    if est_vmem > 16 * 1024 * 1024:
        cp["vmem_limit_bytes"] = int(min(est_vmem + (8 << 20), 48 << 20))

    num_p, den_p = pl.pallas_call(
        kernel,
        out_shape=(
            jax.ShapeDtypeStruct((num_cores * tile_n, 1), jnp.float32),
            jax.ShapeDtypeStruct((num_cores * tile_n, 1), jnp.float32),
        ),
        grid_spec=pltpu.PrefetchScalarGridSpec(
            num_scalar_prefetch=0,
            grid=(num_cores, tiles_per_core),
            in_specs=[
                pl.BlockSpec((tile_n, V), row_block),
                pl.BlockSpec((tile_n, 1), row_block),
                pl.BlockSpec((tile_n, 1), row_block),
            ],
            out_specs=[
                pl.BlockSpec((tile_n, 1), lambda c, j: (c, 0)),
                pl.BlockSpec((tile_n, 1), lambda c, j: (c, 0)),
            ],
        ),
        compiler_params=pltpu.CompilerParams(**cp),
    )(inp2, tgt2, msk2)

    # Tiny final reduction + divide in the wrapper (matches reference; divides
    # by zero if sum(mask) == 0, same as the PyTorch module).
    return -jnp.sum(num_p) / jnp.sum(den_p)


def _reference(inp, target, mask):
    T = inp.shape[1]
    target = target[:, :T].astype(jnp.int32)
    mask = mask[:, :T].astype(jnp.float32)
    g = jnp.take_along_axis(inp.astype(jnp.float32), target[..., None], axis=2)[..., 0]
    return jnp.sum(-g * mask) / jnp.sum(mask)


if __name__ == "__main__":
    key = jax.random.PRNGKey(0)
    k1, k2, k3, k4 = jax.random.split(key, 4)

    # --- Test 1: small f32 case (target/mask longer than T, mask has zeros) ---
    B, T, V = 2, 8, 32
    logits = jax.random.normal(k1, (B, T, V), dtype=jnp.float32)
    logp = jax.nn.log_softmax(logits, axis=-1)
    target = jax.random.randint(k2, (B, T + 2), 0, V, dtype=jnp.int32)
    lengths = jnp.array([T, T - 3], dtype=jnp.int32)
    mask = (jnp.arange(T + 2)[None, :] < lengths[:, None]).astype(jnp.float32)

    loss = language_model_criterion(logp, target, mask)
    jax.block_until_ready(loss)
    ref = _reference(logp, target, mask)
    assert jnp.allclose(loss, ref, rtol=1e-5, atol=1e-5), (loss, ref)

    # --- Test 2: bf16 log-probs, rows not divisible by the tile, forced small
    # tile so the partial-tile / phantom-tile / two-core grid paths all run. ---
    B2, T2, V2 = 3, 13, 160
    logits2 = jax.random.normal(k3, (B2, T2, V2), dtype=jnp.float32)
    logp2 = jax.nn.log_softmax(logits2, axis=-1).astype(jnp.bfloat16)
    target2 = jax.random.randint(k4, (B2, T2 + 1), 0, V2, dtype=jnp.int32)
    lengths2 = jnp.array([T2, T2 - 5, 7], dtype=jnp.int32)
    mask2 = (jnp.arange(T2 + 1)[None, :] < lengths2[:, None]).astype(jnp.float32)

    loss2 = language_model_criterion(logp2, target2, mask2, tile_n=8)
    jax.block_until_ready(loss2)
    ref2 = _reference(logp2, target2, mask2)
    assert jnp.allclose(loss2, ref2, rtol=1e-5, atol=1e-4), (loss2, ref2)

    print("KERNEL_OK")
</pallas_src>

<mosaic_0001>
module attributes {stable_mosaic.version = 11 : i64} {
  func.func @_lm_crit_kernel(%arg0: i32, %arg1: i32, %arg2: memref<16x32xf32, #tpu.memory_space<vmem>>, %arg3: memref<16x1xi32, #tpu.memory_space<vmem>>, %arg4: memref<16x1xf32, #tpu.memory_space<vmem>>, %arg5: memref<16x1xf32, #tpu.memory_space<vmem>>, %arg6: memref<16x1xf32, #tpu.memory_space<vmem>>) attributes {dimension_semantics = [#tpu.dimension_semantics<parallel>, #tpu.dimension_semantics<arbitrary>], iteration_bounds = array<i64: 1, 1>, scalar_prefetch = 0 : i64, scratch_operands = 0 : i64, tpu.core_type = #tpu.core_type<tc>, window_params = [{transform_indices = @transform_0, window_bounds = array<i64: 16, 32>}, {transform_indices = @transform_1, window_bounds = array<i64: 16, 1>}, {transform_indices = @transform_2, window_bounds = array<i64: 16, 1>}, {transform_indices = @transform_3, window_bounds = array<i64: 16, 1>}, {transform_indices = @transform_4, window_bounds = array<i64: 16, 1>}]} {
    %c0_i32 = arith.constant 0 : i32
    %0 = arith.cmpi eq, %arg1, %c0_i32 : i32
    %1 = arith.extui %0 : i1 to i32
    %c0_i32_0 = arith.constant 0 : i32
    %2 = arith.cmpi ne, %1, %c0_i32_0 : i32
    scf.if %2 {
      %cst_17 = arith.constant 0.000000e+00 : f32
      %32 = vector.broadcast %cst_17 : f32 to vector<16x1xf32>
      %c0_18 = arith.constant 0 : index
      %c0_19 = arith.constant 0 : index
      %33 = vector.load %arg5[%c0_18, %c0_19] : memref<16x1xf32, #tpu.memory_space<vmem>>, vector<16x1xf32>
      tpu.vector_store %arg5[%c0_18, %c0_19], %32 {strides = array<i32>} : memref<16x1xf32, #tpu.memory_space<vmem>>, vector<16x1xf32>,
      %cst_20 = arith.constant 0.000000e+00 : f32
      %34 = vector.broadcast %cst_20 : f32 to vector<16x1xf32>
      %c0_21 = arith.constant 0 : index
      %c0_22 = arith.constant 0 : index
      %35 = vector.load %arg6[%c0_21, %c0_22] : memref<16x1xf32, #tpu.memory_space<vmem>>, vector<16x1xf32>
      tpu.vector_store %arg6[%c0_21, %c0_22], %34 {strides = array<i32>} : memref<16x1xf32, #tpu.memory_space<vmem>>, vector<16x1xf32>,
    } else {
    }
    %c1_i32 = arith.constant 1 : i32
    %3 = arith.muli %arg0, %c1_i32 : i32
    %4 = arith.addi %3, %arg1 : i32
    %c16_i32 = arith.constant 16 : i32
    %5 = arith.muli %4, %c16_i32 : i32
    %c0 = arith.constant 0 : index
    %c0_1 = arith.constant 0 : index
    %6 = vector.load %arg2[%c0, %c0_1] : memref<16x32xf32, #tpu.memory_space<vmem>>, vector<16x32xf32>
    %c0_2 = arith.constant 0 : index
    %c0_3 = arith.constant 0 : index
    %7 = vector.load %arg3[%c0_2, %c0_3] : memref<16x1xi32, #tpu.memory_space<vmem>>, vector<16x1xi32>
    %8 = tpu.iota {dimensions = array<i32: 0>} : vector<16x1xi32>
    %9 = vector.broadcast %5 : i32 to vector<16x1xi32>
    %10 = arith.addi %9, %8 : vector<16x1xi32>
    %c16_i32_4 = arith.constant 16 : i32
    %11 = vector.broadcast %c16_i32_4 : i32 to vector<16x1xi32>
    %12 = arith.cmpi slt, %10, %11 : vector<16x1xi32>
    %c0_5 = arith.constant 0 : index
    %c0_6 = arith.constant 0 : index
    %13 = vector.load %arg4[%c0_5, %c0_6] : memref<16x1xf32, #tpu.memory_space<vmem>>, vector<16x1xf32>
    %cst = arith.constant 0.000000e+00 : f32
    %14 = vector.broadcast %cst : f32 to vector<16x1xf32>
    %15 = arith.select %12, %13, %14 : vector<16x1xi1>, vector<16x1xf32>
    %16 = tpu.iota {dimensions = array<i32: 1>} : vector<16x32xi32>
    %17 = vector.broadcast %7 : vector<16x1xi32> to vector<16x32xi32>
    %18 = arith.cmpi eq, %16, %17 : vector<16x32xi32>
    %19 = vector.broadcast %12 : vector<16x1xi1> to vector<16x32xi1>
    %20 = arith.andi %18, %19 : vector<16x32xi1>
    %cst_7 = arith.constant 0.000000e+00 : f32
    %21 = vector.broadcast %cst_7 : f32 to vector<16x32xf32>
    %22 = arith.select %20, %6, %21 : vector<16x32xi1>, vector<16x32xf32>
    %cst_8 = arith.constant dense<0.000000e+00> : vector<16xf32>
    %23 = vector.multi_reduction <add>, %22, %cst_8 [1] : vector<16x32xf32> to vector<16xf32>
    %24 = vector.shape_cast %23 : vector<16xf32> to vector<16x1xf32>
    %c0_9 = arith.constant 0 : index
    %c0_10 = arith.constant 0 : index
    %25 = vector.load %arg5[%c0_9, %c0_10] : memref<16x1xf32, #tpu.memory_space<vmem>>, vector<16x1xf32>
    %26 = arith.mulf %24, %15 : vector<16x1xf32>
    %27 = arith.addf %25, %26 : vector<16x1xf32>
    %c0_11 = arith.constant 0 : index
    %c0_12 = arith.constant 0 : index
    %28 = vector.load %arg5[%c0_11, %c0_12] : memref<16x1xf32, #tpu.memory_space<vmem>>, vector<16x1xf32>
    tpu.vector_store %arg5[%c0_11, %c0_12], %27 {strides = array<i32>} : memref<16x1xf32, #tpu.memory_space<vmem>>, vector<16x1xf32>,
    %c0_13 = arith.constant 0 : index
    %c0_14 = arith.constant 0 : index
    %29 = vector.load %arg6[%c0_13, %c0_14] : memref<16x1xf32, #tpu.memory_space<vmem>>, vector<16x1xf32>
    %30 = arith.addf %29, %15 : vector<16x1xf32>
    %c0_15 = arith.constant 0 : index
    %c0_16 = arith.constant 0 : index
    %31 = vector.load %arg6[%c0_15, %c0_16] : memref<16x1xf32, #tpu.memory_space<vmem>>, vector<16x1xf32>
    tpu.vector_store %arg6[%c0_15, %c0_16], %30 {strides = array<i32>} : memref<16x1xf32, #tpu.memory_space<vmem>>, vector<16x1xf32>,
    return
  }
  func.func @transform_0(%arg0: i32, %arg1: i32) -> (i32, i32) {
    %c1_i32 = arith.constant 1 : i32
    %0 = arith.muli %arg0, %c1_i32 : i32
    %1 = arith.addi %0, %arg1 : i32
    %c0_i32 = arith.constant 0 : i32
    %2 = arith.minsi %1, %c0_i32 : i32
    %c0_i32_0 = arith.constant 0 : i32
    %c0_i32_1 = arith.constant 0 : i32
    return %2, %c0_i32_0 : i32, i32
  }
  func.func @transform_1(%arg0: i32, %arg1: i32) -> (i32, i32) {
    %c1_i32 = arith.constant 1 : i32
    %0 = arith.muli %arg0, %c1_i32 : i32
    %1 = arith.addi %0, %arg1 : i32
    %c0_i32 = arith.constant 0 : i32
    %2 = arith.minsi %1, %c0_i32 : i32
    %c0_i32_0 = arith.constant 0 : i32
    %c0_i32_1 = arith.constant 0 : i32
    return %2, %c0_i32_0 : i32, i32
  }
  func.func @transform_2(%arg0: i32, %arg1: i32) -> (i32, i32) {
    %c1_i32 = arith.constant 1 : i32
    %0 = arith.muli %arg0, %c1_i32 : i32
    %1 = arith.addi %0, %arg1 : i32
    %c0_i32 = arith.constant 0 : i32
    %2 = arith.minsi %1, %c0_i32 : i32
    %c0_i32_0 = arith.constant 0 : i32
    %c0_i32_1 = arith.constant 0 : i32
    return %2, %c0_i32_0 : i32, i32
  }
  func.func @transform_3(%arg0: i32, %arg1: i32) -> (i32, i32) {
    %c0_i32 = arith.constant 0 : i32
    %c0_i32_0 = arith.constant 0 : i32
    return %arg0, %c0_i32 : i32, i32
  }
  func.func @transform_4(%arg0: i32, %arg1: i32) -> (i32, i32) {
    %c0_i32 = arith.constant 0 : i32
    %c0_i32_0 = arith.constant 0 : i32
    return %arg0, %c0_i32 : i32, i32
  }
}

</mosaic_0001>

<bundles_post_ra>
// kernel: tpu_custom_call.1
= control target key start
LH: loop header
LB: loop body
LE: loop exit
PB: predicated region body
PF: predicated region fallthrough
CT: control target
= control target key end

     0   :  { %v208_v0 = vmov 0   ;;  %vm116_vm0 = vcmask 7168   ;;  %v209_v3 = vmov 0.0   ;;  %v139_v7 = vlaneseq  ;;  %s297_s1 = inlined_call_operand.vmem [shape: s32[16,1], index: 1, kind: input, shape index: {}]   ;;  %s298_s3 = inlined_call_operand.vmem [shape: f32[16,1], index: 3, kind: output, shape index: {0}]   ;;  %s299_s4 = inlined_call_operand.vmem [shape: f32[16,1], index: 4, kind: output, shape index: {1}]   ;;  %s300_s2 = inlined_call_operand.vmem [shape: f32[16,1], index: 2, kind: input, shape index: {}]   ;;  %s301_s0 = inlined_call_operand.vmem [shape: f32[16,32], index: 0, kind: input, shape index: {}]  }
   0x1   :  { %207 = vset.pattern.permute.xlu0 %v208_v0  ;;  %v125_v1 = vld [vmem:[%s297_s1] sm:$0xff]  ;;  %v126_v2 = vld [vmem:[%s297_s1 + $0x8] sm:$0xff]  ;;  %117 = vst.msk [vmem:[%s298_s3] sm:$0xff] %vm116_vm0, %v209_v3  ;;  %vm157_vm1 = vcmask 261120  }
   0x2   :  { %142 = vperm.xlu0 %207, %v125_v1   ;;  %119 = vst.msk [vmem:[%s299_s4] sm:$0xff] %vm116_vm0, %v209_v3  ;;  %v135_v4 = vld [vmem:[%s300_s2] sm:$0xff]  ;;  %v140_v8 = vand.u32 127, %v139_v7  ;;  %v124_v13 = vld [vmem:[%s301_s0 + $0x8] sm:$0xff] }
   0x3   :  { %118 = vst.msk [vmem:[%s298_s3 + $0x8] sm:$0xff] %vm116_vm0, %v209_v3  ;;  %v123_v9 = vld [vmem:[%s301_s0] sm:$0xff]  ;;  %v136_v17 = vld [vmem:[%s300_s2 + $0x8] sm:$0xff] }
   0x4   :  { %120 = vst.msk [vmem:[%s299_s4 + $0x8] sm:$0xff] %vm116_vm0, %v209_v3 }
   0x8   :  { %v164_v20 = vld [vmem:[%s298_s3] sm:$0xff] }
   0x9   :  { %v173_v5 = vld [vmem:[%s299_s4] sm:$0xff] }
   0xa   :  { %145 = vperm.xlu0 %207, %v126_v2   ;;  %v175_v6 = vadd.f32 %v173_v5, %v135_v4  ;;  %v165_v24 = vld [vmem:[%s298_s3 + $0x8] sm:$0xff] }
   0xb   :  { %v174_v18 = vld [vmem:[%s299_s4 + $0x8] sm:$0xff] }
   0xc   :  { %177 = vst.msk [vmem:[%s299_s4] sm:$0xff] %vm116_vm0, %v175_v6  ;;  %v176_v19 = vadd.f32 %v174_v18, %v136_v17 }
   0xe   :  { %178 = vst.msk [vmem:[%s299_s4 + $0x8] sm:$0xff] %vm116_vm0, %v176_v19 }
  0x74   :  { %v143_v10 = vpop.permute.xlu0 %142 }
  0x75   :  { %vm147_vm2 = vcmp.eq.s32.totalorder %v140_v8, %v143_v10 }
  0x76   :  { %v155_v11 = vsel %vm147_vm2, %v123_v9, 0.0 }
  0x77   :  { %v158_v12 = vsel %vm157_vm1, %v155_v11, 0.0 }
  0x78   :  { %159 = vadd.xlane.f32.xlu1 %v158_v12 }
  0x7c   :  { %v146_v14 = vpop.permute.xlu0 %145 }
  0x7d   :  { %vm148_vm3 = vcmp.eq.s32.totalorder %v140_v8, %v146_v14 }
  0x7e   :  { %v156_v15 = vsel %vm148_vm3, %v124_v13, 0.0 }
  0x7f   :  { %v161_v16 = vsel %vm157_vm1, %v156_v15, 0.0 }
  0x80   :  { %162 = vadd.xlane.f32.xlu1 %v161_v16 }
  0xeb   :  { %v160_v21 = vpop.xlane.xlu1 %159 }
  0xec   :  { %v166_v22 = vmul.f32 %v160_v21, %v135_v4 }
  0xee   :  { %v168_v23 = vadd.f32 %v166_v22, %v164_v20 }
  0xf0   :  { %171 = vst.msk [vmem:[%s298_s3] sm:$0xff] %vm116_vm0, %v168_v23 }
  0xf3   :  { %v163_v25 = vpop.xlane.xlu1 %162 }
  0xf4   :  { %v167_v26 = vmul.f32 %v163_v25, %v136_v17 }
  0xf6   :  { %v169_v27 = vadd.f32 %v167_v26, %v165_v24 }
  0xf8   :  { %172 = vst.msk [vmem:[%s298_s3 + $0x8] sm:$0xff] %vm116_vm0, %v169_v27 }

</bundles_post_ra>
